<compile_context>
chip_gen: v7x
topology: tpu7x:2x2x1
jax: 0.10.0
libtpu: 0.0.40
codegen_flags: <defaults>
</compile_context>

<pallas_src>
import functools

import jax
import jax.numpy as jnp
from jax.experimental import pallas as pl
from jax.experimental.pallas import tpu as pltpu

LN_EPS = 1e-5  # PyTorch nn.LayerNorm default


def _round_up(x, m):
    return (x + m - 1) // m * m


def _league_kernel(x_ref, dist_ref, w1t_ref, b1_ref, gamma_ref, beta_ref,
                   e_ref, o_ref, acc_ref):
    # Grid: (row_tiles, vocab_tiles); vocab axis is the reduction axis (last).
    # x_ref:    (TM, D)   block of flattened representation rows (resident per row tile)
    # dist_ref: (TM, TV)  block of flattened distribution rows (vocab chunk)
    # w1t_ref:  (D, D)    pre-transposed Linear weight (in_features, out_features)
    # b1/gamma/beta: (1, D) f32
    # e_ref:    (TV, D)   vocab chunk of embed_adapter.weight
    # acc_ref:  (TM, D)   f32 accumulator (linear_out + running soft_out)
    v = pl.program_id(1)

    @pl.when(v == 0)
    def _():
        # Linear(dim, dim) -> LayerNorm -> ReLU, computed once per row tile.
        x = x_ref[...].astype(w1t_ref.dtype)
        h = jnp.dot(x, w1t_ref[...], preferred_element_type=jnp.float32)
        h = h + b1_ref[...]
        # Fused LayerNorm stats (single pass); gamma folded into the rsqrt scale.
        mean = jnp.mean(h, axis=-1, keepdims=True)
        mean_sq = jnp.mean(h * h, axis=-1, keepdims=True)
        var = mean_sq - mean * mean
        scale = gamma_ref[...] * jax.lax.rsqrt(var + LN_EPS)
        hn = (h - mean) * scale + beta_ref[...]
        acc_ref[...] = jnp.maximum(hn, 0.0)  # ReLU -> init accumulator

    # soft_out partial: (TM, TV) @ (TV, D), accumulated over vocab chunks.
    acc_ref[...] += jnp.dot(dist_ref[...].astype(e_ref.dtype), e_ref[...],
                            preferred_element_type=jnp.float32)

    @pl.when(v == pl.num_programs(1) - 1)
    def _():
        o_ref[...] = acc_ref[...].astype(o_ref.dtype)


@functools.partial(jax.jit, static_argnames=("tm", "tv", "matmul_dtype"))
def _adapter_league_out(representation, distribution, w1, b1, gamma, beta,
                        embed_weight, *, tm=256, tv=512,
                        matmul_dtype=jnp.bfloat16):
    T, B, D = representation.shape
    V = distribution.shape[-1]
    rows = T * B

    # Tile sizes: rows multiple of 8 (f32 sublane), vocab multiple of 128 (lane).
    tm_eff = min(tm, _round_up(rows, 8))
    rows_p = _round_up(rows, tm_eff)
    tv_eff = min(tv, _round_up(V, 128))
    v_p = _round_up(V, tv_eff)

    x = representation.reshape(rows, D)
    dist = distribution.reshape(rows, V)  # native dtype; cast per-tile in kernel

    if rows_p != rows:
        x = jnp.pad(x, ((0, rows_p - rows), (0, 0)))
        dist = jnp.pad(dist, ((0, rows_p - rows), (0, 0)))
    if v_p != V:
        dist = jnp.pad(dist, ((0, 0), (0, v_p - V)))
        embed_weight = jnp.pad(embed_weight, ((0, v_p - V), (0, 0)))

    # Pre-transpose W1 once in HBM (no in-kernel XLU transpose) and store the
    # resident weight tiles in the MXU operand dtype (bf16 halves VMEM traffic).
    w1t = jnp.transpose(w1).astype(matmul_dtype)
    e_w = embed_weight.astype(matmul_dtype)

    # LN params cast to f32 once (tiny, resident in VMEM).
    b1_f = b1.astype(jnp.float32)
    gamma_f = gamma.astype(jnp.float32)
    beta_f = beta.astype(jnp.float32)

    grid = (rows_p // tm_eff, v_p // tv_eff)
    out_dtype = representation.dtype

    in_bytes = jnp.dtype(representation.dtype).itemsize
    d_bytes = jnp.dtype(distribution.dtype).itemsize
    w_bytes = jnp.dtype(matmul_dtype).itemsize
    o_bytes = jnp.dtype(out_dtype).itemsize

    vmem_bytes = int(
        2 * tm_eff * D * in_bytes          # x tile, double-buffered
        + 2 * tm_eff * tv_eff * d_bytes    # dist tile, double-buffered
        + 2 * (D * D + tv_eff * D) * w_bytes  # W1^T + E chunk
        + 2 * 3 * D * 4                    # b1 / gamma / beta
        + 2 * tm_eff * D * o_bytes         # output tile
        + tm_eff * D * 4                   # f32 accumulator
        + (4 << 20))                       # headroom
    vmem_limit = min(max(vmem_bytes, 32 << 20), 64 << 20)

    cost = pl.CostEstimate(
        flops=2 * rows_p * D * (D + v_p),
        transcendentals=0,
        bytes_accessed=(rows_p * D * (in_bytes + o_bytes)
                        + rows_p * v_p * d_bytes
                        + (D * D + v_p * D) * w_bytes))

    out_flat = pl.pallas_call(
        _league_kernel,
        out_shape=jax.ShapeDtypeStruct((rows_p, D), out_dtype),
        grid_spec=pltpu.PrefetchScalarGridSpec(
            num_scalar_prefetch=0,
            grid=grid,
            in_specs=[
                pl.BlockSpec((tm_eff, D), lambda i, v: (i, 0)),       # x rows
                pl.BlockSpec((tm_eff, tv_eff), lambda i, v: (i, v)),  # dist rows
                pl.BlockSpec((D, D), lambda i, v: (0, 0)),            # W1^T (resident)
                pl.BlockSpec((1, D), lambda i, v: (0, 0)),            # b1
                pl.BlockSpec((1, D), lambda i, v: (0, 0)),            # gamma
                pl.BlockSpec((1, D), lambda i, v: (0, 0)),            # beta
                pl.BlockSpec((tv_eff, D), lambda i, v: (v, 0)),       # E vocab chunk
            ],
            out_specs=pl.BlockSpec((tm_eff, D), lambda i, v: (i, 0)),
            scratch_shapes=[pltpu.VMEM((tm_eff, D), jnp.float32)],
        ),
        compiler_params=pltpu.CompilerParams(
            dimension_semantics=("parallel", "arbitrary"),
            vmem_limit_bytes=vmem_limit),
        cost_estimate=cost,
    )(x, dist, w1t, b1_f, gamma_f, beta_f, e_w)

    return out_flat[:rows].reshape(T, B, D)


def adapter_league_forward(representation, distribution, w1, b1, gamma, beta,
                           embed_weight, padding=None, *, tm=256, tv=512,
                           matmul_dtype=jnp.bfloat16):
    """Adapter forward for adapter_type='league' (strategy=None).

    Mirrors fairseq's Adapter.forward((representation, distribution), padding):
    returns (out, padding) with padding passed through unchanged.
    """
    out = _adapter_league_out(representation, distribution, w1, b1, gamma,
                              beta, embed_weight, tm=tm, tv=tv,
                              matmul_dtype=matmul_dtype)
    return out, padding


def _reference_league(representation, distribution, w1, b1, gamma, beta,
                      embed_weight):
    T, B, D = representation.shape
    dist = distribution.astype(representation.dtype)  # torch: type_as(representation)
    h = jnp.einsum("tbd,od->tbo", representation, w1,
                   precision=jax.lax.Precision.HIGHEST) + b1[0]
    mean = h.mean(-1, keepdims=True)
    var = ((h - mean) ** 2).mean(-1, keepdims=True)
    hn = (h - mean) / jnp.sqrt(var + LN_EPS) * gamma[0] + beta[0]
    linear_out = jnp.maximum(hn, 0.0)
    soft_out = jnp.dot(dist.reshape(T * B, -1), embed_weight,
                       precision=jax.lax.Precision.HIGHEST).reshape(T, B, D)
    return linear_out + soft_out


if __name__ == "__main__":
    key = jax.random.PRNGKey(0)
    T, B, D, V = 8, 4, 128, 256  # seq_len, batch, dim, dictionary_size

    k = jax.random.split(key, 6)
    representation = jax.random.normal(k[0], (T, B, D), dtype=jnp.float32)
    # distribution is a softmax-like probability tensor over the dictionary
    distribution = jax.nn.softmax(
        jax.random.normal(k[1], (T, B, V), dtype=jnp.float32), axis=-1)

    # Parameter shapes per Adapter.__init__ for 'league':
    #   linear_adapter = Linear(dim, dim) + LayerNorm(dim) + ReLU
    #   embed_adapter  = Linear(dim, dictionary_size, bias=False) -> weight (V, D)
    w1 = jax.random.normal(k[2], (D, D), dtype=jnp.float32) / jnp.sqrt(D)
    b1 = jax.random.normal(k[3], (1, D), dtype=jnp.float32) * 0.01
    gamma = jnp.ones((1, D), dtype=jnp.float32)
    beta = jnp.zeros((1, D), dtype=jnp.float32)
    embed_weight = jax.random.normal(k[4], (V, D), dtype=jnp.float32) * 0.05
    padding = jnp.zeros((B, T), dtype=bool)

    ref = _reference_league(representation, distribution, w1, b1, gamma, beta,
                            embed_weight)

    # bf16 MXU operand path (default / fast path on v6e & v7x); small tiles here to
    # exercise the multi-step row grid and the vocab-axis accumulator.
    out_bf16, pad_out = adapter_league_forward(
        representation, distribution, w1, b1, gamma, beta, embed_weight,
        padding=padding, tm=16, tv=128, matmul_dtype=jnp.bfloat16)
    out_bf16 = jax.block_until_ready(out_bf16)
    assert out_bf16.shape == (T, B, D)
    assert pad_out is padding
    assert jnp.max(jnp.abs(out_bf16 - ref)) < 1e-1, "bf16 path mismatch vs reference"

    # f32 MXU operand path (tight numeric check); default tm/tv exercise the
    # clamp-to-problem-size logic (single grid step at these toy shapes).
    out_f32, _ = adapter_league_forward(
        representation, distribution, w1, b1, gamma, beta, embed_weight,
        padding=padding, matmul_dtype=jnp.float32)
    out_f32 = jax.block_until_ready(out_f32)
    assert jnp.max(jnp.abs(out_f32 - ref)) < 5e-3, "f32 path mismatch vs reference"

    print("KERNEL_OK")
</pallas_src>

<mosaic_0001>
module attributes {stable_mosaic.version = 11 : i64} {
  func.func @_league_kernel(%arg0: i32, %arg1: i32, %arg2: memref<16x128xf32, #tpu.memory_space<vmem>>, %arg3: memref<16x128xf32, #tpu.memory_space<vmem>>, %arg4: memref<128x128xbf16, #tpu.memory_space<vmem>>, %arg5: memref<1x128xf32, #tpu.memory_space<vmem>>, %arg6: memref<1x128xf32, #tpu.memory_space<vmem>>, %arg7: memref<1x128xf32, #tpu.memory_space<vmem>>, %arg8: memref<128x128xbf16, #tpu.memory_space<vmem>>, %arg9: memref<16x128xf32, #tpu.memory_space<vmem>>, %arg10: memref<16x128xf32, #tpu.memory_space<vmem>>) attributes {dimension_semantics = [#tpu.dimension_semantics<parallel>, #tpu.dimension_semantics<arbitrary>], iteration_bounds = array<i64: 2, 2>, scalar_prefetch = 0 : i64, scratch_operands = 1 : i64, tpu.core_type = #tpu.core_type<tc>, window_params = [{transform_indices = @transform_0, window_bounds = array<i64: 16, 128>}, {transform_indices = @transform_1, window_bounds = array<i64: 16, 128>}, {pipeline_mode = #tpu.pipeline_mode<synchronous>, transform_indices = @transform_2, window_bounds = array<i64: 128, 128>}, {pipeline_mode = #tpu.pipeline_mode<synchronous>, transform_indices = @transform_3, window_bounds = array<i64: 1, 128>}, {pipeline_mode = #tpu.pipeline_mode<synchronous>, transform_indices = @transform_4, window_bounds = array<i64: 1, 128>}, {pipeline_mode = #tpu.pipeline_mode<synchronous>, transform_indices = @transform_5, window_bounds = array<i64: 1, 128>}, {transform_indices = @transform_6, window_bounds = array<i64: 128, 128>}, {transform_indices = @transform_7, window_bounds = array<i64: 16, 128>}]} {
    %c0_i32 = arith.constant 0 : i32
    %0 = arith.cmpi eq, %arg1, %c0_i32 : i32
    %1 = arith.extui %0 : i1 to i32
    %c0_i32_0 = arith.constant 0 : i32
    %2 = arith.cmpi ne, %1, %c0_i32_0 : i32
    scf.if %2 {
      %c0_9 = arith.constant 0 : index
      %c0_10 = arith.constant 0 : index
      %13 = vector.load %arg2[%c0_9, %c0_10] : memref<16x128xf32, #tpu.memory_space<vmem>>, vector<16x128xf32>
      %14 = arith.truncf %13 : vector<16x128xf32> to vector<16x128xbf16>
      %c0_11 = arith.constant 0 : index
      %c0_12 = arith.constant 0 : index
      %15 = vector.load %arg4[%c0_11, %c0_12] : memref<128x128xbf16, #tpu.memory_space<vmem>>, vector<128x128xbf16>
      %cst_13 = arith.constant dense<0.000000e+00> : vector<16x128xf32>
      %16 = tpu.matmul %14, %15, %cst_13 {dimension_numbers = #tpu.dot_dimension_numbers<[1], [0], [0], [1], [0, 0, 1, 1], [], []>} : vector<16x128xbf16>, vector<128x128xbf16>, vector<16x128xf32> -> vector<16x128xf32>
      %c0_14 = arith.constant 0 : index
      %c0_15 = arith.constant 0 : index
      %17 = vector.load %arg5[%c0_14, %c0_15] : memref<1x128xf32, #tpu.memory_space<vmem>>, vector<1x128xf32>
      %18 = vector.broadcast %17 : vector<1x128xf32> to vector<16x128xf32>
      %19 = arith.addf %16, %18 : vector<16x128xf32>
      %cst_16 = arith.constant dense<0.000000e+00> : vector<16xf32>
      %20 = vector.multi_reduction <add>, %19, %cst_16 [1] : vector<16x128xf32> to vector<16xf32>
      %21 = vector.shape_cast %20 : vector<16xf32> to vector<16x1xf32>
      %cst_17 = arith.constant 1.280000e+02 : f32
      %22 = vector.broadcast %cst_17 : f32 to vector<16x1xf32>
      %23 = arith.divf %21, %22 : vector<16x1xf32>
      %24 = arith.mulf %19, %19 : vector<16x128xf32>
      %cst_18 = arith.constant dense<0.000000e+00> : vector<16xf32>
      %25 = vector.multi_reduction <add>, %24, %cst_18 [1] : vector<16x128xf32> to vector<16xf32>
      %26 = vector.shape_cast %25 : vector<16xf32> to vector<16x1xf32>
      %cst_19 = arith.constant 1.280000e+02 : f32
      %27 = vector.broadcast %cst_19 : f32 to vector<16x1xf32>
      %28 = arith.divf %26, %27 : vector<16x1xf32>
      %29 = arith.mulf %23, %23 : vector<16x1xf32>
      %30 = arith.subf %28, %29 : vector<16x1xf32>
      %c0_20 = arith.constant 0 : index
      %c0_21 = arith.constant 0 : index
      %31 = vector.load %arg6[%c0_20, %c0_21] : memref<1x128xf32, #tpu.memory_space<vmem>>, vector<1x128xf32>
      %cst_22 = arith.constant 9.99999974E-6 : f32
      %32 = vector.broadcast %cst_22 : f32 to vector<16x1xf32>
      %33 = arith.addf %30, %32 : vector<16x1xf32>
      %34 = math.rsqrt %33 : vector<16x1xf32>
      %35 = vector.broadcast %31 : vector<1x128xf32> to vector<16x128xf32>
      %36 = vector.broadcast %34 : vector<16x1xf32> to vector<16x128xf32>
      %37 = arith.mulf %35, %36 : vector<16x128xf32>
      %38 = vector.broadcast %23 : vector<16x1xf32> to vector<16x128xf32>
      %39 = arith.subf %19, %38 : vector<16x128xf32>
      %40 = arith.mulf %39, %37 : vector<16x128xf32>
      %c0_23 = arith.constant 0 : index
      %c0_24 = arith.constant 0 : index
      %41 = vector.load %arg7[%c0_23, %c0_24] : memref<1x128xf32, #tpu.memory_space<vmem>>, vector<1x128xf32>
      %42 = vector.broadcast %41 : vector<1x128xf32> to vector<16x128xf32>
      %43 = arith.addf %40, %42 : vector<16x128xf32>
      %cst_25 = arith.constant 0.000000e+00 : f32
      %44 = vector.broadcast %cst_25 : f32 to vector<16x128xf32>
      %45 = arith.maximumf %43, %44 : vector<16x128xf32>
      %c0_26 = arith.constant 0 : index
      %c0_27 = arith.constant 0 : index
      %46 = vector.load %arg10[%c0_26, %c0_27] : memref<16x128xf32, #tpu.memory_space<vmem>>, vector<16x128xf32>
      tpu.vector_store %arg10[%c0_26, %c0_27], %45 {strides = array<i32>} : memref<16x128xf32, #tpu.memory_space<vmem>>, vector<16x128xf32>,
    } else {
    }
    %c0 = arith.constant 0 : index
    %c0_1 = arith.constant 0 : index
    %3 = vector.load %arg10[%c0, %c0_1] : memref<16x128xf32, #tpu.memory_space<vmem>>, vector<16x128xf32>
    %c0_2 = arith.constant 0 : index
    %c0_3 = arith.constant 0 : index
    %4 = vector.load %arg3[%c0_2, %c0_3] : memref<16x128xf32, #tpu.memory_space<vmem>>, vector<16x128xf32>
    %5 = arith.truncf %4 : vector<16x128xf32> to vector<16x128xbf16>
    %c0_4 = arith.constant 0 : index
    %c0_5 = arith.constant 0 : index
    %6 = vector.load %arg8[%c0_4, %c0_5] : memref<128x128xbf16, #tpu.memory_space<vmem>>, vector<128x128xbf16>
    %cst = arith.constant dense<0.000000e+00> : vector<16x128xf32>
    %7 = tpu.matmul %5, %6, %cst {dimension_numbers = #tpu.dot_dimension_numbers<[1], [0], [0], [1], [0, 0, 1, 1], [], []>} : vector<16x128xbf16>, vector<128x128xbf16>, vector<16x128xf32> -> vector<16x128xf32>
    %8 = arith.addf %3, %7 : vector<16x128xf32>
    %c0_6 = arith.constant 0 : index
    %c0_7 = arith.constant 0 : index
    %9 = vector.load %arg10[%c0_6, %c0_7] : memref<16x128xf32, #tpu.memory_space<vmem>>, vector<16x128xf32>
    tpu.vector_store %arg10[%c0_6, %c0_7], %8 {strides = array<i32>} : memref<16x128xf32, #tpu.memory_space<vmem>>, vector<16x128xf32>,
    %c1_i32 = arith.constant 1 : i32
    %10 = arith.cmpi eq, %arg1, %c1_i32 : i32
    %11 = arith.extui %10 : i1 to i32
    %c0_i32_8 = arith.constant 0 : i32
    %12 = arith.cmpi ne, %11, %c0_i32_8 : i32
    scf.if %12 {
      %c0_9 = arith.constant 0 : index
      %c0_10 = arith.constant 0 : index
      %13 = vector.load %arg10[%c0_9, %c0_10] : memref<16x128xf32, #tpu.memory_space<vmem>>, vector<16x128xf32>
      %c0_11 = arith.constant 0 : index
      %c0_12 = arith.constant 0 : index
      %14 = vector.load %arg9[%c0_11, %c0_12] : memref<16x128xf32, #tpu.memory_space<vmem>>, vector<16x128xf32>
      tpu.vector_store %arg9[%c0_11, %c0_12], %13 {strides = array<i32>} : memref<16x128xf32, #tpu.memory_space<vmem>>, vector<16x128xf32>,
    } else {
    }
    return
  }
  func.func @transform_0(%arg0: i32, %arg1: i32) -> (i32, i32) {
    %c0_i32 = arith.constant 0 : i32
    %c0_i32_0 = arith.constant 0 : i32
    return %arg0, %c0_i32 : i32, i32
  }
  func.func @transform_1(%arg0: i32, %arg1: i32) -> (i32, i32) {
    %c0_i32 = arith.constant 0 : i32
    return %arg0, %arg1 : i32, i32
  }
  func.func @transform_2(%arg0: i32, %arg1: i32) -> (i32, i32) {
    %c0_i32 = arith.constant 0 : i32
    %c0_i32_0 = arith.constant 0 : i32
    %c0_i32_1 = arith.constant 0 : i32
    return %c0_i32, %c0_i32_0 : i32, i32
  }
  func.func @transform_3(%arg0: i32, %arg1: i32) -> (i32, i32) {
    %c0_i32 = arith.constant 0 : i32
    %c0_i32_0 = arith.constant 0 : i32
    %c0_i32_1 = arith.constant 0 : i32
    return %c0_i32, %c0_i32_0 : i32, i32
  }
  func.func @transform_4(%arg0: i32, %arg1: i32) -> (i32, i32) {
    %c0_i32 = arith.constant 0 : i32
    %c0_i32_0 = arith.constant 0 : i32
    %c0_i32_1 = arith.constant 0 : i32
    return %c0_i32, %c0_i32_0 : i32, i32
  }
  func.func @transform_5(%arg0: i32, %arg1: i32) -> (i32, i32) {
    %c0_i32 = arith.constant 0 : i32
    %c0_i32_0 = arith.constant 0 : i32
    %c0_i32_1 = arith.constant 0 : i32
    return %c0_i32, %c0_i32_0 : i32, i32
  }
  func.func @transform_6(%arg0: i32, %arg1: i32) -> (i32, i32) {
    %c0_i32 = arith.constant 0 : i32
    %c0_i32_0 = arith.constant 0 : i32
    return %arg1, %c0_i32 : i32, i32
  }
  func.func @transform_7(%arg0: i32, %arg1: i32) -> (i32, i32) {
    %c0_i32 = arith.constant 0 : i32
    %c0_i32_0 = arith.constant 0 : i32
    return %arg0, %c0_i32 : i32, i32
  }
}

</mosaic_0001>

<bundles_post_ra>
// kernel: _adapter_league_out.1
= control target key start
LH: loop header
LB: loop body
LE: loop exit
PB: predicated region body
PF: predicated region fallthrough
CT: control target
= control target key end

     0   :  { %s1403_s0 = inlined_call_operand.vmem [shape: f32[32,128], index: 0, kind: input, shape index: {}]   ;;  %s1404_s1 = inlined_call_operand.vmem [shape: f32[32,256], index: 1, kind: input, shape index: {}]   ;;  %s1405_s2 = inlined_call_operand.vmem [shape: bf16[128,128], index: 2, kind: input, shape index: {}]   ;;  %s1406_s3 = inlined_call_operand.vmem [shape: f32[1,128], index: 3, kind: input, shape index: {}]   ;;  %s1407_s4 = inlined_call_operand.vmem [shape: f32[1,128], index: 4, kind: input, shape index: {}]   ;;  %s1408_s5 = inlined_call_operand.vmem [shape: f32[1,128], index: 5, kind: input, shape index: {}]   ;;  %s1409_s6 = inlined_call_operand.vmem [shape: bf16[256,128], index: 6, kind: input, shape index: {}]   ;;  %s1410_s7 = inlined_call_operand.hbm [shape: f32[32,128], index: 7, kind: output, shape index: {}]  }
   0x1   :  { %1418 = sst [smem:[#allocation14_spill]] %s1404_s1 }
   0x2   :  { %12 = vsyncpa [#allocation5], 0 }
   0x3   :  { %14 = vsyncpa [#allocation5 + $0x1], 0  ;;  %s1161_s24 = smov 0   ;;  %s1163_s25 = smov 0  }
   0x4   :  { %s1165_s26 = smov 0   ;;  %s1167_s27 = smov 0  }
   0x5   :  { %s1169_s28 = smov 0   ;;  %s1171_s29 = smov 0  }
   0x6   :  { %s1173_s30 = smov 0   ;;  %s1175_s8 = smov 0  }
   0x7   :  { %s1177_s9 = smov 0   ;;  %s1179_s10 = smov 0  }
   0x8 LB: > { %1419 = sst [smem:[#allocation7_spill]] %s1092_s28  ;;  %s788_s11 = sadd.s32 4294967295, %s1112_s10   ;;  %s1112_s10 = sphi %s1179_s10, %s20_s10   ;;  %s1108_s9 = sphi %s1177_s9, %s1437_s9   ;;  %s1104_s8 = sphi %s1175_s8, %s1436_s8   ;;  %s1100_s30 = sphi %s1173_s30, %s1435_s30   ;;  %s1096_s29 = sphi %s1171_s29, %s1434_s29   ;;  %s1092_s28 = sphi %s1169_s28, %s1433_s28   ;;  %s1088_s27 = sphi %s1167_s27, %s1432_s27   ;;  %s1084_s26 = sphi %s1165_s26, %s1440_s26   ;;  %s1080_s25 = sphi %s1163_s25, %s1439_s25   ;;  %s1076_s24 = sphi %s1161_s24, %s1438_s24  }
   0x9   : > { %1420 = sst [smem:[#allocation8_spill]] %s1104_s8  ;;  %s789_s12 = sadd.s32 4294967294, %s1112_s10  }
   0xa   : > { %1421 = sst [smem:[#allocation9_spill]] %s1108_s9  ;;  %s29_s13 = sadd.s32 1, %s1104_s8 }
   0xb   : > { %s32_s14 = sadd.s32 1, %s1108_s9  ;;  %p30_p0 = scmp.ge.s32.totalorder %s29_s13, 2 }
   0xc   : > { %s67_s15 = sadd.s32 1, %s1092_s28  ;;  %p74_p1 = scmp.ne.s32.totalorder %s1092_s28, %s1088_s27 }
   0xd   : > { %p75_p2 = scmp.eq.s32.totalorder %s1112_s10, 0  ;;  %s1442_s13 = smov (%p30_p0, %s29_s13), 0 }
   0xe   : > { %1422 = sst [smem:[#allocation10_spill]] %s1442_s13  ;;  %s1444_s14 = smov (!%p30_p0, %s32_s14), %s1108_s9 }
   0xf   : > { %s63_s16 = ssub.s32 %s1104_s8, %s1442_s13  ;;  %p1224_p3 = por %p75_p2, %p74_p1 }
  0x10   : > { %p34_p4 = scmp.ge.s32.totalorder %s1444_s14, 2  ;;  %s203_s18 = sadd.s32 1, %s1084_s26 }
  0x11   : > { %p213_p5 = scmp.ne.s32.totalorder %s1084_s26, %s1080_s25  ;;  %p214_p6 = scmp.eq.s32.totalorder %s788_s11, 3 }
  0x12   : > { %s1446_s14 = smov (%p34_p4, %s1444_s14), 0  ;;  %p219_p8 = scmp.ne.s32.totalorder %s1080_s25, %s1076_s24 }
  0x13   : > { %1424 = sst [smem:[#allocation11_spill]] %s1446_s14  ;;  %p1233_p7 = por %p214_p6, %p213_p5 }
  0x14   : > { %s62_s20 = ssub.s32 %s1108_s9, %s1446_s14  ;;  %p220_p9 = scmp.eq.s32.totalorder %s789_s12, 3 }
  0x15   : > { %s64_s21 = sor.u32 %s63_s16, %s62_s20  ;;  %p201_p10 = scmp.eq.s32.totalorder %s62_s20, 0 }
  0x16   : > { %p65_p11 = scmp.eq.s32.totalorder %s64_s21, 0  ;;  %p1241_p12 = por %p220_p9, %p219_p8 }
  0x17   : > { %s1246_s23 = scalar_select %p201_p10, %s1084_s26, %s203_s18  }
  0x18   : > { %s1426_s22 = scalar_select %p1241_p12, 1, 0 }
  0x19   : > { %s1249_s11 = scalar_select %p65_p11, %s1092_s28, %s67_s15  }
  0x1a   : > { %1427 = sst [smem:[#allocation12_spill]] %s1426_s22  ;;  %p791_p13 = scmp.ge.s32.totalorder %s1112_s10, 4 }
  0x1b   : > { %1428 = sst [smem:[#allocation13_spill]] %s1249_s11 }
  0x1c   : > { %248 = sbr.rel (%p791_p13) target bundleno = 46 (0x2e), region = 32 }
  0x23   : > { %260 = sbr.rel (!%p1224_p3) target bundleno = 46 (0x2e), region = 40  ;;  %s262_s12 = sand.u32 (%p1224_p3), 1, %s1092_s28  }
  0x24   : > { %s829_s16 = sshll.u32 (%p1224_p3), %s1108_s9, 2  ;;  %s792_s20 = sshll.u32 (%p1224_p3), %s262_s12, 4 }
  0x25   : > { %s267_s21 = sadd.s32 (%p1224_p3), %s1104_s8, %s829_s16  ;;  %s1429_s1 = sld [smem:[#allocation14_spill]] (%p1224_p3) }
  0x26   : > { %s795_s14 = sshll.u32 (%p1224_p3), %s267_s21, 3  ;;  %s264_s15 = scalar_lea.vmem (%p1224_p3), [#allocation3], %s792_s20 }
  0x2b   : > { %s269_s18 = scalar_lea.vmem %s1429_s1, %s795_s14 }
  0x2c   : > { %v299_v0 = vld [vmem:[%s269_s18] sm:$0xff]  ;;  %v301_v1 = vld [vmem:[%s269_s18 + $0x10] sm:$0xff] }
  0x2d   : > { %300 = vst [vmem:[%s264_s15] sm:$0xff] %v299_v0  ;;  %302 = vst [vmem:[%s264_s15 + $0x8] sm:$0xff] %v301_v1 }
  0x2e PF: > { %p796_p0 = scmp.ge.s32.totalorder %s1112_s10, 1  ;;  %p316_p1 = scmp.lt.s32.totalorder %s1112_s10, 5 }
  0x30   : > { %p317_p2 = pnand %p796_p0, %p316_p1 }
  0x31   : > { %s323_s13 = sand.u32 (!%p317_p2), 1, %s1088_s27   ;;  %s1416_s14 = sand.u32 (!%p317_p2), 1, %s1080_s25  }
  0x32   : > { %320 = sbr.rel (%p317_p2) target bundleno = 763 (0x2fb), region = 82  ;;  %s1264_s17 = sshll.u32 (!%p317_p2), %s323_s13, 4 }
  0x33   : > { %s798_s22 = sshll.u32 (!%p317_p2), %s1416_s14, 4  ;;  %s799_s12 = sshll.u32 (!%p317_p2), %s1100_s30, 1 }
  0x34   : > { %s801_s16 = sshll.u32 (!%p317_p2), %s1096_s29, 4  ;;  %p365_p3 = scmp.lt.s32.totalorder (!%p317_p2), %s799_s12, 3 }
  0x35   : > { %p372_p4 = scmp.lt.s32.totalorder (!%p317_p2), %s801_s16, 31  ;;  %s325_s8 = scalar_lea.vmem (!%p317_p2), [#allocation3], %s1264_s17 }
  0x36   : > { %s1281_s14 = scalar_lea.vmem (!%p317_p2), [#allocation4], %s798_s22  ;;  %p803_p5 = scmp.ne.s32.totalorder (!%p317_p2), %s1096_s29, 0 }
  0x39   : > { %s1448_s12 = smov (!%p365_p3, %s799_s12), 3  ;;  %s1450_s16 = smov (!%p372_p4, %s801_s16), 31 }
  0x3a   : > { %s800_s20 = sshll.u32 %s1448_s12, 3  ;;  %s802_s1 = sshll.u32 %s1450_s16, 2  ;;  %v982_v2 = vld [vmem:[%s1405_s2] sm:$0xff] (!%p803_p5)   ;;  %v1114_v3 = vmov (!%p803_p5), 0.0   ;;  %v983_v4 = vld [vmem:[%s1405_s2 + $0x8] sm:$0xff] (!%p803_p5)   ;;  %vm1115_vm0 = vmmov (!%p803_p5), 0  }
  0x3b   : > { %s1273_s15 = scalar_lea.vmem %s1403_s0, %s800_s20  ;;  %s1278_s13 = scalar_lea.vmem %s1409_s6, %s802_s1  ;;  %849 = vmatprep.subr.bf16.mxu0 (!%p803_p5), %v1114_v3  ;;  %865 = vmatprep.mubr.msk.bf16.mxu0 (!%p803_p5), %vm1115_vm0, %v1114_v3  ;;  %v984_v5 = vld [vmem:[%s1405_s2 + $0x10] sm:$0xff] (!%p803_p5)   ;;  %v985_v6 = vld [vmem:[%s1405_s2 + $0x18] sm:$0xff] (!%p803_p5)   ;;  %v986_v7 = vld [vmem:[%s1405_s2 + $0x20] sm:$0xff] (!%p803_p5)  }
  0x3c   : > { %382 = sbr.rel (%p803_p5) target bundleno = 479 (0x1df), region = 90  ;;  %850 = vmatpush3.bf16.msra.mxu0 (!%p803_p5), %v982_v2  ;;  %v987_v8 = vld [vmem:[%s1405_s2 + $0x28] sm:$0xff] (!%p803_p5)   ;;  %v988_v9 = vld [vmem:[%s1405_s2 + $0x30] sm:$0xff] (!%p803_p5)   ;;  %v989_v10 = vld [vmem:[%s1405_s2 + $0x38] sm:$0xff] (!%p803_p5)  }
  0x3d   : > { %851 = vmatprep.subr.bf16.mxu0 (!%p803_p5), %v1114_v3  ;;  %v383_v11 = vld [vmem:[%s1273_s15] sm:$0xff] (!%p803_p5)  ;;  %v384_v12 = vld [vmem:[%s1273_s15 + $0x8] sm:$0xff] (!%p803_p5) }
  0x3e   : > { %v385_v13 = vpack.c.bf16 (!%p803_p5), %v384_v12, %v383_v11  ;;  %v804_v14 = vld [vmem:[%s1406_s3] ss:$0 sm:$0xff] (!%p803_p5) }
  0x3f   : > { %v813_v37 = vld [vmem:[%s1407_s4] ss:$0 sm:$0xff] (!%p803_p5) }
  0x40   : > { %852 = vmatpush3.bf16.msra.mxu0 (!%p803_p5), %v983_v4  ;;  %v814_v41 = vld [vmem:[%s1408_s5] ss:$0 sm:$0xff] (!%p803_p5) }
  0x41   : > { %853 = vmatprep.subr.bf16.mxu0 (!%p803_p5), %v1114_v3 }
  0x44   : > { %854 = vmatpush3.bf16.msra.mxu0 %v984_v5 }
  0x45   : > { %855 = vmatprep.subr.bf16.mxu0 %v1114_v3 }
  0x48   : > { %856 = vmatpush3.bf16.msra.mxu0 %v985_v6 }
  0x49   : > { %857 = vmatprep.subr.bf16.mxu0 %v1114_v3 }
  0x4c   : > { %858 = vmatpush3.bf16.msra.mxu0 %v986_v7 }
  0x4d   : > { %859 = vmatprep.subr.bf16.mxu0 %v1114_v3 }
  0x50   : > { %860 = vmatpush3.bf16.msra.mxu0 %v987_v8 }
  0x51   : > { %861 = vmatprep.subr.bf16.mxu0 %v1114_v3 }
  0x54   : > { %862 = vmatpush3.bf16.msra.mxu0 %v988_v9 }
  0x55   : > { %863 = vmatprep.subr.bf16.mxu0 %v1114_v3 }
  0x58   : > { %864 = vmatpush3.bf16.msra.mxu0 %v989_v10 }
  0x5b   : > { %866 = vmatmul.mubr.bf16.vlgmr.msra.gmra.mrb[0].mxu0 %v385_v13 }
 0x12e   : > { %v491_v15 = vpop.f32.mrb[0].mxu0 }
 0x12f   : > { %v492_v16 = vadd.f32 %v804_v14, %v491_v15  ;;  %v867_v17 = vpop.f32.mrb[1].mxu0 }
 0x130   : > { %v494_v18 = vpop.f32.mrb[2].mxu0 }
 0x131   : > { %v495_v19 = vadd.f32 %v804_v14, %v494_v18  ;;  %498 = vadd.xlane.f32.xlu0 %v492_v16  ;;  %v868_v20 = vpop.f32.mrb[3].mxu0  ;;  %v505_v21 = vmul.f32 %v492_v16, %v492_v16 }
 0x133   : > { %507 = vadd.xlane.f32.xlu1 %v505_v21  ;;  %v506_v22 = vmul.f32 %v495_v19, %v495_v19 }
 0x135   : > { %500 = vadd.xlane.f32.xlu0 %v495_v19 }
 0x137   : > { %509 = vadd.xlane.f32.xlu1 %v506_v22 }
 0x1be   : > { %v499_v23 = vpop.xlane.xlu0 %498 }
 0x1bf   : > { %v503_v24 = vmul.f32 0.0078125, %v499_v23 }
 0x1c0   : > { %v508_v25 = vpop.xlane.xlu1 %507 }
 0x1c1   : > { %v513_v26 = vmul.f32 %v503_v24, %v503_v24  ;;  %v511_v27 = vmul.f32 0.0078125, %v508_v25  ;;  %v530_v39 = vsub.f32 %v492_v16, %v503_v24 }
 0x1c2   : > { %v501_v28 = vpop.xlane.xlu0 %500 }
 0x1c3   : > { %v515_v29 = vsub.f32 %v511_v27, %v513_v26  ;;  %v504_v30 = vmul.f32 0.0078125, %v501_v28 }
 0x1c4   : > { %v510_v31 = vpop.xlane.xlu1 %509 }
 0x1c5   : > { %v518_v32 = vadd.f32 1e-05, %v515_v29  ;;  %v514_v33 = vmul.f32 %v504_v30, %v504_v30  ;;  %v512_v34 = vmul.f32 0.0078125, %v510_v31  ;;  %v531_v45 = vsub.f32 %v495_v19, %v504_v30 }
 0x1c7   : > { %990 = vrsqrt.f32 %v518_v32  ;;  %v516_v35 = vsub.f32 %v512_v34, %v514_v33 }
 0x1c9   : > { %v519_v36 = vadd.f32 1e-05, %v516_v35 }
 0x1cb   : > { %992 = vrsqrt.f32 %v519_v36 }
 0x1d1   : > { %v991_v38 = vpop.eup %990 }
 0x1d2   : > { %v528_v40 = vmul.f32 %v991_v38, %v813_v37 }
 0x1d4   : > { %v532_v42 = vmul.f32 %v530_v39, %v528_v40 }
 0x1d5   : > { %v993_v43 = vpop.eup %992 }
 0x1d6   : > { %v541_v44 = vadd.f32 %v814_v41, %v532_v42  ;;  %v529_v46 = vmul.f32 %v993_v43, %v813_v37 }
 0x1d8   : > { %v543_v47 = vmax.f32 %v541_v44, 0.0  ;;  %v533_v48 = vmul.f32 %v531_v45, %v529_v46 }
 0x1da   : > { %545 = vst [vmem:[#allocation2] sm:$0xff] %v543_v47  ;;  %v542_v49 = vadd.f32 %v814_v41, %v533_v48 }
 0x1dc   : > { %v544_v50 = vmax.f32 %v542_v49, 0.0 }
 0x1de   : > { %546 = vst [vmem:[#allocation2 + $0x8] sm:$0xff] %v544_v50 }
 0x1df PF: > { %v994_v51 = vld [vmem:[%s1278_s13] sm:$0xff]   ;;  %v1116_v52 = vmov 0.0   ;;  %v995_v53 = vld [vmem:[%s1278_s13 + $0x8] sm:$0xff]   ;;  %vm1117_vm1 = vmmov 0   ;;  %v996_v54 = vld [vmem:[%s1278_s13 + $0x10] sm:$0xff]   ;;  %p823_p6 = scmp.ne.s32.totalorder %s1096_s29, 1 }
 0x1e0   : > { %869 = vmatprep.subr.bf16.mxu0 %v1116_v52  ;;  %885 = vmatprep.mubr.msk.bf16.mxu0 %vm1117_vm1, %v1116_v52  ;;  %v997_v55 = vld [vmem:[%s1278_s13 + $0x18] sm:$0xff]   ;;  %v998_v56 = vld [vmem:[%s1278_s13 + $0x20] sm:$0xff]   ;;  %v999_v57 = vld [vmem:[%s1278_s13 + $0x28] sm:$0xff]  }
 0x1e1   : > { %870 = vmatpush3.bf16.msra.mxu0 %v994_v51  ;;  %v1000_v58 = vld [vmem:[%s1278_s13 + $0x30] sm:$0xff]   ;;  %v1001_v59 = vld [vmem:[%s1278_s13 + $0x38] sm:$0xff]   ;;  %v547_v63 = vld [vmem:[#allocation2] sm:$0xff] }
 0x1e2   : > { %871 = vmatprep.subr.bf16.mxu0 %v1116_v52  ;;  %v549_v60 = vld [vmem:[%s325_s8] sm:$0xff]  ;;  %v550_v61 = vld [vmem:[%s325_s8 + $0x8] sm:$0xff] }
 0x1e3   : > { %v551_v62 = vpack.c.bf16 %v550_v61, %v549_v60 }
 0x1e5   : > { %872 = vmatpush3.bf16.msra.mxu0 %v995_v53  ;;  %v548_v1 = vld [vmem:[#allocation2 + $0x8] sm:$0xff] }
 0x1e6   : > { %873 = vmatprep.subr.bf16.mxu0 %v1116_v52 }
 0x1e9   : > { %874 = vmatpush3.bf16.msra.mxu0 %v996_v54 }
 0x1ea   : > { %875 = vmatprep.subr.bf16.mxu0 %v1116_v52 }
 0x1ed   : > { %876 = vmatpush3.bf16.msra.mxu0 %v997_v55 }
 0x1ee   : > { %877 = vmatprep.subr.bf16.mxu0 %v1116_v52 }
 0x1f1   : > { %878 = vmatpush3.bf16.msra.mxu0 %v998_v56 }
 0x1f2   : > { %879 = vmatprep.subr.bf16.mxu0 %v1116_v52 }
 0x1f5   : > { %880 = vmatpush3.bf16.msra.mxu0 %v999_v57 }
 0x1f6   : > { %881 = vmatprep.subr.bf16.mxu0 %v1116_v52 }
 0x1f9   : > { %882 = vmatpush3.bf16.msra.mxu0 %v1000_v58 }
 0x1fa   : > { %883 = vmatprep.subr.bf16.mxu0 %v1116_v52 }
 0x1fd   : > { %884 = vmatpush3.bf16.msra.mxu0 %v1001_v59 }
 0x200   : > { %886 = vmatmul.mubr.bf16.vlgmr.msra.gmra.mrb[0].mxu0 %v551_v62 }
 0x2d2   : > { %664 = sbr.rel (%p823_p6) target bundleno = 737 (0x2e1), region = 94 }
 0x2d3   : > { %v650_v0 = vpop.f32.mrb[0].mxu0 }
 0x2d4   : > { %v657_v2 = vadd.f32 %v650_v0, %v547_v63  ;;  %v887_v3 = vpop.f32.mrb[1].mxu0 }
 0x2d5   : > { %v653_v4 = vpop.f32.mrb[2].mxu0 }
 0x2d6   : > { %659 = vst [vmem:[#allocation2] sm:$0xff] %v657_v2  ;;  %v658_v5 = vadd.f32 %v653_v4, %v548_v1  ;;  %v888_v6 = vpop.f32.mrb[3].mxu0 }
 0x2d8   : > { %660 = vst [vmem:[#allocation2 + $0x8] sm:$0xff] %v658_v5 }
 0x2dd   : > { %v665_v7 = vld [vmem:[#allocation2] sm:$0xff] }
 0x2de   : > { %667 = vst [vmem:[%s1281_s14] sm:$0xff] %v665_v7 }
 0x2df   : > { %v666_v8 = vld [vmem:[#allocation2 + $0x8] sm:$0xff] }
 0x2e0   : > { %668 = vst [vmem:[%s1281_s14 + $0x8] sm:$0xff] %v666_v8 }
 0x2e1 PF: > { %s830_s8 = sshll.u32 %s1100_s30, 8  ;;  %s683_s18 = sshll.u32 %s1281_s14, 4  ;;  %s1341_s18 = int_to_ptr.vmem [resolvable:$true] %s683_s18 }
 0x2e2   : > { %s1338_s21 = scalar_lea.hbm %s1410_s7, %s830_s8  ;;  %s1430_s29 = sand.u32 1, %s1080_s25  }
 0x2e3   : > { %s1345_s27 = scalar_lea.sflag [#allocation5], %s1430_s29  ;;  %s1002_s12 = scalar_lea.vmem %s1341_s18, 256 }
 0x2e4   : > { %p1003_p8 = scmp.ne.s32.totalorder %s1341_s18, %s1002_s12  ;;  %s1118_s30 = smov [#allocation4]  }
 0x2e5   : > { %s1006_s16 = sshll.u32 %s1118_s30, 4  ;;  %s1007_s16 = int_to_ptr.vmem [resolvable:$false] %s1006_s16 }
 0x2e6   : > { %p1004_p9 = pnand %p1003_p8, %p1233_p7  ;;  %s1008_s1 = scalar_lea.vmem %s1007_s16, 512 }
 0x2e7   : > { %p1009_p11 = scmp.lt.s32.totalorder %s1341_s18, %s1007_s16  ;;  %p1010_p13 = scmp.lt.s32.totalorder %s1008_s1, %s1002_s12 }
 0x2e8   : > { %p1005_p10 = pneg %p1004_p9 }
 0x2e9   : > { %p1011_p0 = por %p1010_p13, %p1009_p11 }
 0x2eb   : > { %p1012_p1 = pnand %p1011_p0, %p1005_p10 }
 0x2ed   : > { %1015 = shalt.err (!%p1012_p1)
}
 0x2ee   : > { %s1016_s14 = scalar_lea.hbm %s1338_s21, 256  ;;  %s1020_s15 = scalar_lea.hbm %s1410_s7, 512 }
 0x2ef   : > { %p1017_p2 = scmp.ne.s32.totalorder %s1338_s21, %s1016_s14  ;;  %p1021_p5 = scmp.lt.u32.totalorder %s1338_s21, %s1410_s7 }
 0x2f0   : > { %p1022_p6 = scmp.lt.u32.totalorder %s1020_s15, %s1016_s14  ;;  %p1024_p9 = scmp.lt.u32.totalorder %s1016_s14, %s1338_s21 }
 0x2f1   : > { %p1018_p3 = pnand %p1017_p2, %p1233_p7 }
 0x2f2   : > { %p1023_p8 = por %p1022_p6, %p1021_p5 }
 0x2f3   : > { %p1019_p4 = pneg %p1018_p3 }
 0x2f4   : > { %p1025_p10 = por %p1024_p9, %p1023_p8 }
 0x2f6   : > { %p1026_p11 = pnand %p1025_p10, %p1019_p4 }
 0x2f8   : > { %1029 = shalt.err (!%p1026_p11)
}
 0x2f9   : > { %s1119_s20 = smov 128   ;;  %s1120_s8 = smov 8  }
 0x2fa   : > { %889 = dma.vmem_to_hbm [thread:$0]  (%p1233_p7), %s1341_s18, 256, %s1338_s21, %s1345_s27, %s1119_s20, %s1119_s20, %s1120_s8  }
 0x2fb PF: > { %p895_p13 = scmp.ge.s32.totalorder %s1112_s10, 2  ;;  %s698_s13 = sand.u32 1, %s1076_s24  }
 0x2fc   : > { %s699_s29 = scalar_lea.sflag [#allocation5], %s698_s13 }
 0x2fd   : > { %p892_p0 = pnand %p895_p13, %p1241_p12 }
 0x2ff   : > { %1071 = dma.done.wait (!%p892_p0), %s699_s29, 256  }
 0x300   : > { %1073 = vsyncadd (!%p892_p0), %s699_s29, 4294967040  ;;  %s20_s10 = sadd.s32 1, %s1112_s10   ;;  %s1432_s27 = sld [smem:[#allocation7_spill]] }
 0x301   : > { %p17_p1 = scmp.ge.s32.totalorder %s20_s10, 6   ;;  %s1433_s28 = sld [smem:[#allocation13_spill]] }
 0x302   : > { %s1434_s29 = sld [smem:[#allocation8_spill]]  ;;  %s1435_s30 = sld [smem:[#allocation9_spill]] }
 0x303   : > { %s1436_s8 = sld [smem:[#allocation10_spill]]  ;;  %s1437_s9 = sld [smem:[#allocation11_spill]] }
 0x304   : > { %s1438_s24 = smov %s1080_s25  ;;  %s1439_s25 = smov %s1084_s26 }
 0x305   : > { %s1440_s26 = smov %s1246_s23  ;;  %19 = sbr.rel (!%p17_p1) target bundleno = 8 (0x8), region = 140 }
 0x30c   :  { %704 = vsyncpa [#allocation5], 1 }
 0x30d   :  { %706 = vsyncpa [#allocation5 + $0x1], 1 }

</bundles_post_ra>
